<compile_context>
chip_gen: v7x
topology: tpu7x:2x2x1
jax: 0.10.0
libtpu: 0.0.40
codegen_flags: <defaults>
</compile_context>

<pallas_src>
import jax
import jax.numpy as jnp
from jax.experimental import pallas as pl
from jax.experimental.pallas import tpu as pltpu


def _round_up(x, m):
    return ((x + m - 1) // m) * m


def decoder_kernel(z_ref, w1_ref, b1_ref, w2_ref, b2_ref, o_ref):
    # z_ref:  (TB, K)    f32
    # w1_ref: (K, H)     f32
    # b1_ref: (1, H)     f32
    # w2_ref: (H, Npad)  bf16   (Npad = 896, lane-dense for the MXU)
    # b2_ref: (1, N)     f32    (N = 784, unpadded)
    # o_ref:  (TB, N)    f32
    z = z_ref[...]
    w1 = w1_ref[...]
    tb = z.shape[0]
    k_dim = z.shape[1]
    hidden = w1.shape[1]
    n_out = o_ref.shape[1]

    # Layer 1: K is tiny (2) -> two broadcast FMAs on the VPU, keep the MXU free.
    h = jnp.broadcast_to(b1_ref[...], (tb, hidden))
    for k in range(k_dim):                      # static unroll, K == 2
        h = h + z[:, k:k + 1] * w1[k:k + 1, :]
    h = jnp.maximum(h, 0.0)                     # ReLU (VPU)

    # Layer 2: bf16 x bf16 MXU matmul on the 896-wide padded weights, f32 accumulate.
    y = jnp.dot(h.astype(jnp.bfloat16), w2_ref[...],
                preferred_element_type=jnp.float32)

    # Keep only the real 784 columns, add bias, sigmoid via a single EUP tanh:
    # sigmoid(y) == 0.5 * tanh(0.5 * y) + 0.5
    y = y[:, :n_out] + b2_ref[...]
    o_ref[...] = 0.5 * jnp.tanh(0.5 * y) + 0.5


def prepare_decoder_params(w1, b1, w2, b2):
    """One-time weight prep (hoisted out of the per-call path): pad w2 columns to a
    multiple of 128 lanes and cast to bf16; biases shaped (1, features)."""
    out_features = w2.shape[1]
    out_pad = _round_up(out_features, 128)      # 784 -> 896
    w2_p = jnp.pad(w2, ((0, 0), (0, out_pad - out_features))).astype(jnp.bfloat16)
    return w1, b1.reshape(1, -1), w2_p, b2.reshape(1, -1)


def decoder_forward(z, w1, b1, w2_p, b2, *, tb=None):
    """z: (B, latent_dim) f32 -> (B, 1, 28, 28) f32, matching the PyTorch module.
    Expects weights already processed by prepare_decoder_params()."""
    B, K = z.shape
    H = w1.shape[1]
    out_pad = w2_p.shape[1]          # 896 (MXU / DMA width)
    out_features = b2.shape[1]       # 784 (stored width)

    # Batch tile: multiple of 8 sublanes. Small batches -> a single tile (no grid
    # overhead). Large batches -> tiles up to 1024 rows to amortize the ~0.35us
    # per-grid-step cost, but at least 2 tiles so the "parallel" axis can shard
    # across v7x's two TensorCores.
    if tb is None:
        b8 = max(16, _round_up(B, 8))
        if b8 <= 512:
            tb = b8
        else:
            tb = min(1024, _round_up((b8 + 1) // 2, 256))
    B_pad = _round_up(B, tb)
    z_p = z if B_pad == B else jnp.pad(z, ((0, B_pad - B), (0, 0)))

    grid = (B_pad // tb,)

    cost = pl.CostEstimate(
        flops=2 * B_pad * H * out_pad + 2 * B_pad * K * H,
        transcendentals=B_pad * out_features,            # one tanh per output elem
        bytes_accessed=(w2_p.size * 2 + w1.size * 4 + b1.size * 4 + b2.size * 4
                        + z_p.size * 4 + B_pad * out_features * 4),
    )

    y = pl.pallas_call(
        decoder_kernel,
        out_shape=jax.ShapeDtypeStruct((B_pad, out_features), jnp.float32),
        grid_spec=pl.GridSpec(
            grid=grid,
            in_specs=[
                pl.BlockSpec((tb, K), lambda i: (i, 0)),            # z tile per step
                pl.BlockSpec((K, H), lambda i: (0, 0)),             # w1 resident
                pl.BlockSpec((1, H), lambda i: (0, 0)),             # b1 resident
                pl.BlockSpec((H, out_pad), lambda i: (0, 0)),       # w2 (bf16) resident
                pl.BlockSpec((1, out_features), lambda i: (0, 0)),  # b2 resident
            ],
            out_specs=pl.BlockSpec((tb, out_features), lambda i: (i, 0)),
        ),
        compiler_params=pltpu.CompilerParams(
            dimension_semantics=("parallel",),   # shard batch tiles across TCs on v7x
            vmem_limit_bytes=48 << 20,           # room for 1024-row tiles on v5e too
        ),
        cost_estimate=cost,
    )(z_p, w1, b1, w2_p, b2)

    # Drop batch padding (columns are already exact), then PyTorch: y.view(-1,1,28,28)
    out = y if B_pad == B else y[:B]
    return out.reshape(-1, 1, 28, 28)


def init_params(key, latent_dim=2, hidden=512, out_hw=28):
    """Deterministic init mirroring nn.Linear default (U[-1/sqrt(fan_in), 1/sqrt(fan_in)])."""
    out_features = out_hw * out_hw
    k1, k2, k3, k4 = jax.random.split(key, 4)
    bound1 = 1.0 / jnp.sqrt(latent_dim)
    bound2 = 1.0 / jnp.sqrt(hidden)
    # Stored as (in, out) so the kernel does z @ W (equivalent to PyTorch z @ W.T).
    w1 = jax.random.uniform(k1, (latent_dim, hidden), jnp.float32, -bound1, bound1)
    b1 = jax.random.uniform(k2, (1, hidden), jnp.float32, -bound1, bound1)
    w2 = jax.random.uniform(k3, (hidden, out_features), jnp.float32, -bound2, bound2)
    b2 = jax.random.uniform(k4, (1, out_features), jnp.float32, -bound2, bound2)
    return w1, b1, w2, b2


if __name__ == "__main__":
    key = jax.random.PRNGKey(0)
    k_params, k_z = jax.random.split(key)

    latent_dim = 2
    batch = 8
    w1, b1, w2, b2 = init_params(k_params, latent_dim=latent_dim)
    params = prepare_decoder_params(w1, b1, w2, b2)   # one-time weight prep (hoisted)
    fwd = jax.jit(decoder_forward)

    z = jax.random.normal(k_z, (batch, latent_dim), jnp.float32)
    y = jax.block_until_ready(fwd(z, *params))

    # Reference check in plain JAX (f32 math; kernel uses bf16 for the 512x784
    # matmul with f32 accumulation, so allow a small tolerance).
    ref = jax.nn.sigmoid(jnp.maximum(z @ w1 + b1, 0.0) @ w2 + b2).reshape(-1, 1, 28, 28)
    assert y.shape == (batch, 1, 28, 28), y.shape
    max_err = float(jnp.max(jnp.abs(y - ref)))
    assert jnp.allclose(y, ref, atol=2e-2, rtol=0.0), max_err

    print("KERNEL_OK")
</pallas_src>

<mosaic_0001>
module attributes {stable_mosaic.version = 11 : i64} {
  func.func @decoder_kernel(%arg0: i32, %arg1: memref<16x2xf32, #tpu.memory_space<vmem>>, %arg2: memref<2x512xf32, #tpu.memory_space<vmem>>, %arg3: memref<1x512xf32, #tpu.memory_space<vmem>>, %arg4: memref<512x896xbf16, #tpu.memory_space<vmem>>, %arg5: memref<1x784xf32, #tpu.memory_space<vmem>>, %arg6: memref<16x784xf32, #tpu.memory_space<vmem>>) attributes {dimension_semantics = [#tpu.dimension_semantics<parallel>], iteration_bounds = array<i64: 1>, scalar_prefetch = 0 : i64, scratch_operands = 0 : i64, tpu.core_type = #tpu.core_type<tc>, window_params = [{transform_indices = @transform_0, window_bounds = array<i64: 16, 2>}, {pipeline_mode = #tpu.pipeline_mode<synchronous>, transform_indices = @transform_1, window_bounds = array<i64: 2, 512>}, {pipeline_mode = #tpu.pipeline_mode<synchronous>, transform_indices = @transform_2, window_bounds = array<i64: 1, 512>}, {pipeline_mode = #tpu.pipeline_mode<synchronous>, transform_indices = @transform_3, window_bounds = array<i64: 512, 896>}, {pipeline_mode = #tpu.pipeline_mode<synchronous>, transform_indices = @transform_4, window_bounds = array<i64: 1, 784>}, {transform_indices = @transform_5, window_bounds = array<i64: 16, 784>}]} {
    %c0 = arith.constant 0 : index
    %c0_0 = arith.constant 0 : index
    %0 = vector.load %arg1[%c0, %c0_0] : memref<16x2xf32, #tpu.memory_space<vmem>>, vector<16x2xf32>
    %c0_1 = arith.constant 0 : index
    %c0_2 = arith.constant 0 : index
    %1 = vector.load %arg2[%c0_1, %c0_2] : memref<2x512xf32, #tpu.memory_space<vmem>>, vector<2x512xf32>
    %c0_3 = arith.constant 0 : index
    %c0_4 = arith.constant 0 : index
    %2 = vector.load %arg3[%c0_3, %c0_4] : memref<1x512xf32, #tpu.memory_space<vmem>>, vector<1x512xf32>
    %3 = vector.shape_cast %2 : vector<1x512xf32> to vector<1x512xf32>
    %4 = vector.broadcast %3 : vector<1x512xf32> to vector<16x512xf32>
    %5 = vector.extract_strided_slice %0 {offsets = [0, 0], sizes = [16, 1], strides = [1, 1]} : vector<16x2xf32> to vector<16x1xf32>
    %6 = vector.extract_strided_slice %1 {offsets = [0, 0], sizes = [1, 512], strides = [1, 1]} : vector<2x512xf32> to vector<1x512xf32>
    %7 = vector.broadcast %5 : vector<16x1xf32> to vector<16x512xf32>
    %8 = vector.broadcast %6 : vector<1x512xf32> to vector<16x512xf32>
    %9 = arith.mulf %7, %8 : vector<16x512xf32>
    %10 = arith.addf %4, %9 : vector<16x512xf32>
    %11 = vector.extract_strided_slice %0 {offsets = [0, 1], sizes = [16, 1], strides = [1, 1]} : vector<16x2xf32> to vector<16x1xf32>
    %12 = vector.extract_strided_slice %1 {offsets = [1, 0], sizes = [1, 512], strides = [1, 1]} : vector<2x512xf32> to vector<1x512xf32>
    %13 = vector.broadcast %11 : vector<16x1xf32> to vector<16x512xf32>
    %14 = vector.broadcast %12 : vector<1x512xf32> to vector<16x512xf32>
    %15 = arith.mulf %13, %14 : vector<16x512xf32>
    %16 = arith.addf %10, %15 : vector<16x512xf32>
    %cst = arith.constant 0.000000e+00 : f32
    %17 = vector.broadcast %cst : f32 to vector<16x512xf32>
    %18 = arith.maximumf %16, %17 : vector<16x512xf32>
    %19 = arith.truncf %18 : vector<16x512xf32> to vector<16x512xbf16>
    %c0_5 = arith.constant 0 : index
    %c0_6 = arith.constant 0 : index
    %20 = vector.load %arg4[%c0_5, %c0_6] : memref<512x896xbf16, #tpu.memory_space<vmem>>, vector<512x896xbf16>
    %cst_7 = arith.constant dense<0.000000e+00> : vector<16x896xf32>
    %21 = tpu.matmul %19, %20, %cst_7 {dimension_numbers = #tpu.dot_dimension_numbers<[1], [0], [0], [1], [0, 0, 1, 1], [], []>} : vector<16x512xbf16>, vector<512x896xbf16>, vector<16x896xf32> -> vector<16x896xf32>
    %22 = vector.extract_strided_slice %21 {offsets = [0, 0], sizes = [16, 784], strides = [1, 1]} : vector<16x896xf32> to vector<16x784xf32>
    %c0_8 = arith.constant 0 : index
    %c0_9 = arith.constant 0 : index
    %23 = vector.load %arg5[%c0_8, %c0_9] : memref<1x784xf32, #tpu.memory_space<vmem>>, vector<1x784xf32>
    %24 = vector.broadcast %23 : vector<1x784xf32> to vector<16x784xf32>
    %25 = arith.addf %22, %24 : vector<16x784xf32>
    %cst_10 = arith.constant 5.000000e-01 : f32
    %26 = vector.broadcast %cst_10 : f32 to vector<16x784xf32>
    %27 = arith.mulf %26, %25 : vector<16x784xf32>
    %28 = math.tanh %27 : vector<16x784xf32>
    %cst_11 = arith.constant 5.000000e-01 : f32
    %29 = vector.broadcast %cst_11 : f32 to vector<16x784xf32>
    %30 = arith.mulf %29, %28 : vector<16x784xf32>
    %cst_12 = arith.constant 5.000000e-01 : f32
    %31 = vector.broadcast %cst_12 : f32 to vector<16x784xf32>
    %32 = arith.addf %30, %31 : vector<16x784xf32>
    %c0_13 = arith.constant 0 : index
    %c0_14 = arith.constant 0 : index
    %33 = vector.load %arg6[%c0_13, %c0_14] : memref<16x784xf32, #tpu.memory_space<vmem>>, vector<16x784xf32>
    tpu.vector_store %arg6[%c0_13, %c0_14], %32 {strides = array<i32>} : memref<16x784xf32, #tpu.memory_space<vmem>>, vector<16x784xf32>,
    return
  }
  func.func @transform_0(%arg0: i32) -> (i32, i32) {
    %c0_i32 = arith.constant 0 : i32
    %c0_i32_0 = arith.constant 0 : i32
    return %arg0, %c0_i32 : i32, i32
  }
  func.func @transform_1(%arg0: i32) -> (i32, i32) {
    %c0_i32 = arith.constant 0 : i32
    %c0_i32_0 = arith.constant 0 : i32
    %c0_i32_1 = arith.constant 0 : i32
    return %c0_i32, %c0_i32_0 : i32, i32
  }
  func.func @transform_2(%arg0: i32) -> (i32, i32) {
    %c0_i32 = arith.constant 0 : i32
    %c0_i32_0 = arith.constant 0 : i32
    %c0_i32_1 = arith.constant 0 : i32
    return %c0_i32, %c0_i32_0 : i32, i32
  }
  func.func @transform_3(%arg0: i32) -> (i32, i32) {
    %c0_i32 = arith.constant 0 : i32
    %c0_i32_0 = arith.constant 0 : i32
    %c0_i32_1 = arith.constant 0 : i32
    return %c0_i32, %c0_i32_0 : i32, i32
  }
  func.func @transform_4(%arg0: i32) -> (i32, i32) {
    %c0_i32 = arith.constant 0 : i32
    %c0_i32_0 = arith.constant 0 : i32
    %c0_i32_1 = arith.constant 0 : i32
    return %c0_i32, %c0_i32_0 : i32, i32
  }
  func.func @transform_5(%arg0: i32) -> (i32, i32) {
    %c0_i32 = arith.constant 0 : i32
    %c0_i32_0 = arith.constant 0 : i32
    return %arg0, %c0_i32 : i32, i32
  }
}

</mosaic_0001>

<bundles_post_ra>
// kernel: decoder_forward.1
= control target key start
LH: loop header
LB: loop body
LE: loop exit
PB: predicated region body
PF: predicated region fallthrough
CT: control target
= control target key end

     0   :  { %10 = vsyncpa [#allocation3], 0  ;;  %s2730_s18 = smov [#allocation2]   ;;  %s2917_s0 = inlined_call_operand.vmem [shape: f32[16,2], index: 0, kind: input, shape index: {}]   ;;  %s2918_s1 = inlined_call_operand.vmem [shape: f32[2,512], index: 1, kind: input, shape index: {}]   ;;  %s2919_s2 = inlined_call_operand.vmem [shape: f32[1,512], index: 2, kind: input, shape index: {}]   ;;  %s2920_s3 = inlined_call_operand.hbm [shape: bf16[512,896], index: 3, kind: input, shape index: {}]   ;;  %s2921_s4 = inlined_call_operand.vmem [shape: f32[1,784], index: 4, kind: input, shape index: {}]   ;;  %s2922_s5 = inlined_call_operand.vmem [shape: f32[16,784], index: 5, kind: output, shape index: {}]  }
   0x1   :  { %s22_s19 = sshll.u32 %s2730_s18, 4  ;;  %s2706_s22 = scalar_lea.hbm %s2920_s3, 28672  ;;  %s23_s19 = int_to_ptr.vmem [resolvable:$true] %s22_s19 }
   0x2   :  { %p2707_p0 = scmp.ne.s32.totalorder %s2920_s3, %s2706_s22  ;;  %p2710_p1 = scmp.lt.u32.totalorder %s2706_s22, %s2920_s3 }
   0x4   :  { %p2712_p2 = pnand %p2710_p1, %p2707_p0 }
   0x6   :  { %2715 = shalt.err (!%p2712_p2)
}
   0x7   :  { %s2716_s27 = scalar_lea.vmem %s23_s19, 28672  ;;  %p2721_p4 = scmp.lt.s32.totalorder %s23_s19, %s23_s19 }
   0x8   :  { %p2717_p3 = scmp.ne.s32.totalorder %s23_s19, %s2716_s27  ;;  %p2722_p5 = scmp.lt.s32.totalorder %s2716_s27, %s2716_s27 }
   0xa   :  { %p2723_p6 = por %p2722_p5, %p2721_p4 }
   0xc   :  { %p2724_p7 = pnand %p2723_p6, %p2717_p3 }
   0xe   :  { %2727 = shalt.err (!%p2724_p7)
}
   0xf   :  { %s2731_s28 = smov 448   ;;  %s2732_s29 = smov 28  }
  0x10   :  { %28 = dma.hbm_to_vmem [thread:$0]  %s2920_s3, 28672, %s23_s19, [#allocation3], %s2731_s28, %s2731_s28, %s2732_s29  }
  0x11   :  { %2728 = dma.done.wait [#allocation3], 28672  }
  0x12   :  { %2729 = vsyncadd [#allocation3], 4294938624  ;;  %v2733_v0 = vmov 1   ;;  %v2734_v1 = vmov 0   ;;  %v35_v2 = vld [vmem:[%s2917_s0] sm:$0xff]  ;;  %v36_v3 = vld [vmem:[%s2917_s0 + $0x8] sm:$0xff] }
  0x13   :  { %2356 = vset.pattern.permute.xlu1 %v2733_v0  ;;  %2355 = vset.pattern.permute.xlu0 %v2734_v1  ;;  %v2358_v4 = vld [vmem:[#allocation2 + $0x4] ss:$28 sps:$4 sm:$0xff]   ;;  %v2360_v5 = vld [vmem:[#allocation2 + $0xc] ss:$28 sps:$4 sm:$0xff]   ;;  %v2364_v8 = vld [vmem:[#allocation2 + $0x3c] ss:$28 sps:$4 sm:$0xff]  }
  0x14   :  { %124 = vperm.xlu1 %2356, %v35_v2   ;;  %62 = vperm.xlu0 %2355, %v35_v2   ;;  %v2362_v6 = vld [vmem:[#allocation2] ss:$28 sps:$4 sm:$0xff]   ;;  %v2363_v7 = vld [vmem:[#allocation2 + $0x8] ss:$28 sps:$4 sm:$0xff]   ;;  %v2368_v10 = vld [vmem:[#allocation2 + $0x38] ss:$28 sps:$4 sm:$0xff]  }
  0x15   :  { %1603 = vmatprep.subr.bf16.mxu0 %v2358_v4  ;;  %1689 = vmatprep.subr.bf16.mxu1 %v2360_v5  ;;  %v2366_v9 = vld [vmem:[#allocation2 + $0x44] ss:$28 sps:$4 sm:$0xff]   ;;  %v2370_v12 = vld [vmem:[#allocation2 + $0x74] ss:$28 sps:$4 sm:$0xff]   ;;  %v2372_v13 = vld [vmem:[#allocation2 + $0x7c] ss:$28 sps:$4 sm:$0xff]  }
  0x16   :  { %1604 = vmatpush1.bf16.msra.mxu0 %v2362_v6  ;;  %v2369_v11 = vld [vmem:[#allocation2 + $0x40] ss:$28 sps:$4 sm:$0xff]   ;;  %1690 = vmatpush1.bf16.msra.mxu1 %v2363_v7  ;;  %v2374_v14 = vld [vmem:[#allocation2 + $0x70] ss:$28 sps:$4 sm:$0xff]   ;;  %v2375_v16 = vld [vmem:[#allocation2 + $0x78] ss:$28 sps:$4 sm:$0xff]   ;;  %v40_v6 = vlaneseq }
  0x17   :  { %1605 = vmatprep.subr.bf16.mxu0 %v2364_v8  ;;  %1691 = vmatprep.subr.bf16.mxu1 %v2366_v9  ;;  %v2376_v15 = vld [vmem:[#allocation2 + $0xac] ss:$28 sps:$4 sm:$0xff]   ;;  %v2378_v17 = vld [vmem:[#allocation2 + $0xb4] ss:$28 sps:$4 sm:$0xff]   ;;  %v2382_v19 = vld [vmem:[#allocation2 + $0xe4] ss:$28 sps:$4 sm:$0xff]  }
  0x18   :  { %128 = vperm.xlu1 %2356, %v36_v3   ;;  %67 = vperm.xlu0 %2355, %v36_v3   ;;  %v2380_v18 = vld [vmem:[#allocation2 + $0xa8] ss:$28 sps:$4 sm:$0xff]   ;;  %v2381_v20 = vld [vmem:[#allocation2 + $0xb0] ss:$28 sps:$4 sm:$0xff]   ;;  %v2386_v22 = vld [vmem:[#allocation2 + $0xe0] ss:$28 sps:$4 sm:$0xff]  }
  0x19   :  { %v2384_v21 = vld [vmem:[#allocation2 + $0xec] ss:$28 sps:$4 sm:$0xff]   ;;  %v2388_v23 = vld [vmem:[#allocation2 + $0x11c] ss:$28 sps:$4 sm:$0xff]   ;;  %v2390_v25 = vld [vmem:[#allocation2 + $0x124] ss:$28 sps:$4 sm:$0xff]  }
  0x1a   :  { %1606 = vmatpush1.bf16.msra.mxu0 %v2368_v10  ;;  %1692 = vmatpush1.bf16.msra.mxu1 %v2369_v11  ;;  %v2387_v24 = vld [vmem:[#allocation2 + $0xe8] ss:$28 sps:$4 sm:$0xff]   ;;  %v2392_v26 = vld [vmem:[#allocation2 + $0x118] ss:$28 sps:$4 sm:$0xff]   ;;  %v2393_v28 = vld [vmem:[#allocation2 + $0x120] ss:$28 sps:$4 sm:$0xff]  }
  0x1b   :  { %1607 = vmatprep.subr.bf16.mxu0 %v2370_v12  ;;  %1693 = vmatprep.subr.bf16.mxu1 %v2372_v13  ;;  %v2394_v27 = vld [vmem:[#allocation2 + $0x154] ss:$28 sps:$4 sm:$0xff]   ;;  %v2396_v29 = vld [vmem:[#allocation2 + $0x15c] ss:$28 sps:$4 sm:$0xff]   ;;  %v2400_v31 = vld [vmem:[#allocation2 + $0x18c] ss:$28 sps:$4 sm:$0xff]  }
  0x1c   :  { %2357 = vset.pattern.permute.xlu0 %v2733_v0  ;;  %v2398_v30 = vld [vmem:[#allocation2 + $0x150] ss:$28 sps:$4 sm:$0xff]   ;;  %v2399_v32 = vld [vmem:[#allocation2 + $0x158] ss:$28 sps:$4 sm:$0xff]   ;;  %v2404_v34 = vld [vmem:[#allocation2 + $0x188] ss:$28 sps:$4 sm:$0xff]  }
  0x1d   :  { %v2402_v33 = vld [vmem:[#allocation2 + $0x194] ss:$28 sps:$4 sm:$0xff]   ;;  %v2406_v35 = vld [vmem:[#allocation2 + $0x1c4] ss:$28 sps:$4 sm:$0xff]   ;;  %v2408_v37 = vld [vmem:[#allocation2 + $0x1cc] ss:$28 sps:$4 sm:$0xff]  }
  0x1e   :  { %1608 = vmatpush1.bf16.msra.mxu0 %v2374_v14  ;;  %1694 = vmatpush1.bf16.msra.mxu1 %v2375_v16  ;;  %v2405_v36 = vld [vmem:[#allocation2 + $0x190] ss:$28 sps:$4 sm:$0xff]   ;;  %v2410_v38 = vld [vmem:[#allocation2 + $0x1c0] ss:$28 sps:$4 sm:$0xff]   ;;  %v2411_v40 = vld [vmem:[#allocation2 + $0x1c8] ss:$28 sps:$4 sm:$0xff]  }
  0x1f   :  { %1609 = vmatprep.subr.bf16.mxu0 %v2376_v15  ;;  %1695 = vmatprep.subr.bf16.mxu1 %v2378_v17  ;;  %v2412_v39 = vld [vmem:[#allocation2 + $0x1fc] ss:$28 sps:$4 sm:$0xff]   ;;  %v2414_v41 = vld [vmem:[#allocation2 + $0x204] ss:$28 sps:$4 sm:$0xff]   ;;  %v2418_v43 = vld [vmem:[#allocation2 + $0x234] ss:$28 sps:$4 sm:$0xff]  }
  0x20   :  { %v2416_v42 = vld [vmem:[#allocation2 + $0x1f8] ss:$28 sps:$4 sm:$0xff]   ;;  %v2417_v44 = vld [vmem:[#allocation2 + $0x200] ss:$28 sps:$4 sm:$0xff]   ;;  %v2422_v46 = vld [vmem:[#allocation2 + $0x230] ss:$28 sps:$4 sm:$0xff]  }
  0x21   :  { %v2420_v45 = vld [vmem:[#allocation2 + $0x23c] ss:$28 sps:$4 sm:$0xff]   ;;  %v2424_v47 = vld [vmem:[#allocation2 + $0x26c] ss:$28 sps:$4 sm:$0xff]   ;;  %v2426_v49 = vld [vmem:[#allocation2 + $0x274] ss:$28 sps:$4 sm:$0xff]  }
  0x22   :  { %1610 = vmatpush1.bf16.msra.mxu0 %v2380_v18  ;;  %1696 = vmatpush1.bf16.msra.mxu1 %v2381_v20  ;;  %v2423_v48 = vld [vmem:[#allocation2 + $0x238] ss:$28 sps:$4 sm:$0xff]   ;;  %v2428_v50 = vld [vmem:[#allocation2 + $0x268] ss:$28 sps:$4 sm:$0xff]   ;;  %v2429_v52 = vld [vmem:[#allocation2 + $0x270] ss:$28 sps:$4 sm:$0xff]  }
  0x23   :  { %1611 = vmatprep.subr.bf16.mxu0 %v2382_v19  ;;  %1697 = vmatprep.subr.bf16.mxu1 %v2384_v21  ;;  %v2430_v51 = vld [vmem:[#allocation2 + $0x2a4] ss:$28 sps:$4 sm:$0xff]   ;;  %v2432_v53 = vld [vmem:[#allocation2 + $0x2ac] ss:$28 sps:$4 sm:$0xff]   ;;  %v2436_v55 = vld [vmem:[#allocation2 + $0x2dc] ss:$28 sps:$4 sm:$0xff]  }
  0x24   :  { %v2434_v54 = vld [vmem:[#allocation2 + $0x2a0] ss:$28 sps:$4 sm:$0xff]   ;;  %v2435_v56 = vld [vmem:[#allocation2 + $0x2a8] ss:$28 sps:$4 sm:$0xff]   ;;  %v2440_v58 = vld [vmem:[#allocation2 + $0x2d8] ss:$28 sps:$4 sm:$0xff]  }
  0x25   :  { %v2438_v57 = vld [vmem:[#allocation2 + $0x2e4] ss:$28 sps:$4 sm:$0xff]   ;;  %v2442_v59 = vld [vmem:[#allocation2 + $0x314] ss:$28 sps:$4 sm:$0xff]   ;;  %v2444_v61 = vld [vmem:[#allocation2 + $0x31c] ss:$28 sps:$4 sm:$0xff]  }
  0x26   :  { %1612 = vmatpush1.bf16.msra.mxu0 %v2386_v22  ;;  %1698 = vmatpush1.bf16.msra.mxu1 %v2387_v24  ;;  %v2441_v60 = vld [vmem:[#allocation2 + $0x2e0] ss:$28 sps:$4 sm:$0xff]   ;;  %v2446_v62 = vld [vmem:[#allocation2 + $0x310] ss:$28 sps:$4 sm:$0xff]   ;;  %v2447_v0 = vld [vmem:[#allocation2 + $0x318] ss:$28 sps:$4 sm:$0xff]  }
  0x27   :  { %1613 = vmatprep.subr.bf16.mxu0 %v2388_v23  ;;  %1699 = vmatprep.subr.bf16.mxu1 %v2390_v25  ;;  %v2448_v63 = vld [vmem:[#allocation2 + $0x34c] ss:$28 sps:$4 sm:$0xff]   ;;  %v2450_v1 = vld [vmem:[#allocation2 + $0x354] ss:$28 sps:$4 sm:$0xff]   ;;  %v2456_v3 = vld [vmem:[#allocation2 + $0x384] ss:$28 sps:$4 sm:$0xff]  }
  0x28   :  { %v2452_v2 = vld [vmem:[#allocation2 + $0x348] ss:$28 sps:$4 sm:$0xff]   ;;  %v2453_v4 = vld [vmem:[#allocation2 + $0x350] ss:$28 sps:$4 sm:$0xff]   ;;  %v2783_v7 = vshrl.u32 %v40_v6, 7  ;;  %vm2056_vm0 = vcmask 130048  }
  0x29   :  { %v2459_v5 = vld [vmem:[#allocation2 + $0x38c] ss:$28 sps:$4 sm:$0xff]   ;;  %v37_v14 = vld [vmem:[%s2918_s1] sm:$0xff] }
  0x2a   :  { %1614 = vmatpush1.bf16.msra.mxu0 %v2392_v26  ;;  %1700 = vmatpush1.bf16.msra.mxu1 %v2393_v28  ;;  %v2786_v8 = vsub.s32 1, %v2783_v7  ;;  %v141_v9 = vsub.s32 5, %v2783_v7  ;;  %v2790_v10 = vsub.s32 0, %v2783_v7  ;;  %v2793_v11 = vsub.s32 2, %v2783_v7  ;;  %v38_v26 = vld [vmem:[%s2919_s2] sm:$0xf] }
  0x2b   :  { %1615 = vmatprep.subr.bf16.mxu0 %v2394_v27  ;;  %1701 = vmatprep.subr.bf16.mxu1 %v2396_v29  ;;  %v81_v12 = vsub.s32 4, %v2783_v7  ;;  %v85_v13 = vsub.s32 6, %v2783_v7  ;;  %v2801_v15 = vsub.s32 3, %v2783_v7  ;;  %v145_v16 = vsub.s32 7, %v2783_v7 }
  0x2c   :  { %v142_v17 = vrot.slane %v37_v14, %v141_v9  ;;  %v74_v18 = vrot.slane %v37_v14, %v2790_v10  ;;  %v78_v19 = vrot.slane %v37_v14, %v2793_v11  ;;  %v134_v22 = vrot.slane %v37_v14, %v2786_v8 }
  0x2d   :  { %v82_v20 = vrot.slane %v37_v14, %v81_v12  ;;  %v86_v21 = vrot.slane %v37_v14, %v85_v13  ;;  %v138_v23 = vrot.slane %v37_v14, %v2801_v15  ;;  %v146_v24 = vrot.slane %v37_v14, %v145_v16 }
  0x2e   :  { %1616 = vmatpush1.bf16.msra.mxu0 %v2398_v30  ;;  %1702 = vmatpush1.bf16.msra.mxu1 %v2399_v32  ;;  %v162_v25 = vrot.slane %v142_v17, %v2786_v8  ;;  %v94_v27 = vrot.slane %v74_v18, %v2790_v10  ;;  %v98_v28 = vrot.slane %v78_v19, %v2790_v10 }
  0x2f   :  { %1617 = vmatprep.subr.bf16.mxu0 %v2400_v31  ;;  %1703 = vmatprep.subr.bf16.mxu1 %v2402_v33  ;;  %v102_v29 = vrot.slane %v82_v20, %v2790_v10  ;;  %v106_v30 = vrot.slane %v86_v21, %v2790_v10  ;;  %v154_v31 = vrot.slane %v134_v22, %v2786_v8 }
  0x30   :  { %v158_v32 = vrot.slane %v138_v23, %v2786_v8  ;;  %v2454_v23 = vld [vmem:[#allocation2 + $0x380] ss:$28 sps:$4 sm:$0xff]  }
  0x32   :  { %1618 = vmatpush1.bf16.msra.mxu0 %v2404_v34  ;;  %1704 = vmatpush1.bf16.msra.mxu1 %v2405_v36  ;;  %v43_v36 = vrot.slane %v38_v26, %v2790_v10 }
  0x33   :  { %1619 = vmatprep.subr.bf16.mxu0 %v2406_v35  ;;  %1705 = vmatprep.subr.bf16.mxu1 %v2408_v37  ;;  %v166_v35 = vrot.slane %v146_v24, %v2786_v8  ;;  %v47_v37 = vrot.slane %v38_v26, %v2786_v8 }
  0x36   :  { %1620 = vmatpush1.bf16.msra.mxu0 %v2410_v38  ;;  %1706 = vmatpush1.bf16.msra.mxu1 %v2411_v40  ;;  %v51_v38 = vrot.slane %v38_v26, %v2793_v11  ;;  %v55_v40 = vrot.slane %v38_v26, %v2801_v15  ;;  %v2457_v26 = vld [vmem:[#allocation2 + $0x388] ss:$28 sps:$4 sm:$0xff]  }
  0x37   :  { %1621 = vmatprep.subr.bf16.mxu0 %v2412_v39  ;;  %1707 = vmatprep.subr.bf16.mxu1 %v2414_v41 }
  0x3a   :  { %1622 = vmatpush1.bf16.msra.mxu0 %v2416_v42  ;;  %1708 = vmatpush1.bf16.msra.mxu1 %v2417_v44 }
  0x3b   :  { %1623 = vmatprep.subr.bf16.mxu0 %v2418_v43  ;;  %1709 = vmatprep.subr.bf16.mxu1 %v2420_v45 }
  0x3e   :  { %1624 = vmatpush1.bf16.msra.mxu0 %v2422_v46  ;;  %1710 = vmatpush1.bf16.msra.mxu1 %v2423_v48 }
  0x3f   :  { %1625 = vmatprep.subr.bf16.mxu0 %v2424_v47  ;;  %1711 = vmatprep.subr.bf16.mxu1 %v2426_v49 }
  0x42   :  { %1626 = vmatpush1.bf16.msra.mxu0 %v2428_v50  ;;  %1712 = vmatpush1.bf16.msra.mxu1 %v2429_v52 }
  0x43   :  { %1627 = vmatprep.subr.bf16.mxu0 %v2430_v51  ;;  %1713 = vmatprep.subr.bf16.mxu1 %v2432_v53 }
  0x46   :  { %1628 = vmatpush1.bf16.msra.mxu0 %v2434_v54  ;;  %1714 = vmatpush1.bf16.msra.mxu1 %v2435_v56 }
  0x47   :  { %1629 = vmatprep.subr.bf16.mxu0 %v2436_v55  ;;  %1715 = vmatprep.subr.bf16.mxu1 %v2438_v57 }
  0x4a   :  { %1630 = vmatpush1.bf16.msra.mxu0 %v2440_v58  ;;  %1716 = vmatpush1.bf16.msra.mxu1 %v2441_v60 }
  0x4b   :  { %1631 = vmatprep.subr.bf16.mxu0 %v2442_v59  ;;  %1717 = vmatprep.subr.bf16.mxu1 %v2444_v61 }
  0x4e   :  { %1632 = vmatpush1.bf16.msra.mxu0 %v2446_v62  ;;  %1718 = vmatpush1.bf16.msra.mxu1 %v2447_v0 }
  0x4f   :  { %1633 = vmatprep.subr.bf16.mxu0 %v2448_v63  ;;  %1719 = vmatprep.subr.bf16.mxu1 %v2450_v1 }
  0x52   :  { %1634 = vmatpush1.bf16.msra.mxu0 %v2452_v2  ;;  %1720 = vmatpush1.bf16.msra.mxu1 %v2453_v4 }
  0x53   :  { %1646 = vmatprep.subr.bf16.mxu0 %v2456_v3  ;;  %1732 = vmatprep.subr.bf16.mxu1 %v2459_v5 }
  0x93   :  { %v125_v33 = vpop.permute.xlu1 %124  ;;  %v63_v34 = vpop.permute.xlu0 %62 }
  0x94   :  { %v169_v39 = vmul.f32 %v162_v25, %v125_v33  ;;  %v107_v41 = vmul.f32 %v94_v27, %v63_v34  ;;  %v108_v42 = vmul.f32 %v98_v28, %v63_v34  ;;  %v109_v43 = vmul.f32 %v102_v29, %v63_v34 }
  0x95   :  { %v110_v44 = vmul.f32 %v106_v30, %v63_v34  ;;  %v167_v45 = vmul.f32 %v154_v31, %v125_v33  ;;  %v168_v46 = vmul.f32 %v158_v32, %v125_v33  ;;  %v170_v47 = vmul.f32 %v166_v35, %v125_v33  ;;  %v2465_v33 = vld [vmem:[#allocation2 + $0x3c4] ss:$28 sps:$4 sm:$0xff]  }
  0x96   :  { %v115_v49 = vadd.f32 %v107_v41, %v43_v36  ;;  %v116_v50 = vadd.f32 %v108_v42, %v47_v37  ;;  %v117_v51 = vadd.f32 %v109_v43, %v51_v38  ;;  %v2477_v41 = vld [vmem:[#allocation2 + $0x434] ss:$28 sps:$4 sm:$0xff]   ;;  %v2472_v42 = vld [vmem:[#allocation2 + $0x428] ss:$28 sps:$4 sm:$0xff]  }
  0x97   :  { %v129_v48 = vpop.permute.xlu1 %128  ;;  %v68_v52 = vpop.permute.xlu0 %67  ;;  %v118_v56 = vadd.f32 %v110_v44, %v55_v40  ;;  %v2475_v43 = vld [vmem:[#allocation2 + $0x430] ss:$28 sps:$4 sm:$0xff]   ;;  %v2480_v44 = vld [vmem:[#allocation2 + $0x464] ss:$28 sps:$4 sm:$0xff]  }
  0x98   :  { %v171_v53 = vmul.f32 %v154_v31, %v129_v48  ;;  %v172_v54 = vmul.f32 %v158_v32, %v129_v48  ;;  %v173_v55 = vmul.f32 %v162_v25, %v129_v48  ;;  %v111_v57 = vmul.f32 %v94_v27, %v68_v52  ;;  %v2460_v32 = vld [vmem:[#allocation2 + $0x3b8] ss:$28 sps:$4 sm:$0xff]  }
  0x99   :  { %v112_v58 = vmul.f32 %v98_v28, %v68_v52  ;;  %v113_v59 = vmul.f32 %v102_v29, %v68_v52  ;;  %v114_v60 = vmul.f32 %v106_v30, %v68_v52  ;;  %v174_v61 = vmul.f32 %v166_v35, %v129_v48  ;;  %v2462_v29 = vld [vmem:[#allocation2 + $0x3bc] ss:$28 sps:$4 sm:$0xff]   ;;  %v2492_v52 = vld [vmem:[#allocation2 + $0x4d4] ss:$28 sps:$4 sm:$0xff]  }
  0x9a   :  { %v176_v62 = vadd.f32 %v168_v46, %v116_v50  ;;  %v175_v63 = vadd.f32 %v167_v45, %v115_v49  ;;  %v177_v0 = vadd.f32 %v169_v39, %v117_v51  ;;  %v119_v1 = vadd.f32 %v111_v57, %v43_v36  ;;  %v2463_v35 = vld [vmem:[#allocation2 + $0x3c0] ss:$28 sps:$4 sm:$0xff]   ;;  %v2468_v36 = vld [vmem:[#allocation2 + $0x3f4] ss:$28 sps:$4 sm:$0xff]   ;;  %v2483_v45 = vld [vmem:[#allocation2 + $0x46c] ss:$28 sps:$4 sm:$0xff]  }
  0x9b   :  { %v120_v2 = vadd.f32 %v112_v58, %v47_v37  ;;  %v121_v3 = vadd.f32 %v113_v59, %v51_v38  ;;  %v122_v4 = vadd.f32 %v114_v60, %v55_v40  ;;  %v178_v19 = vadd.f32 %v170_v47, %v118_v56  ;;  %v2471_v37 = vld [vmem:[#allocation2 + $0x3fc] ss:$28 sps:$4 sm:$0xff]   ;;  %v2466_v38 = vld [vmem:[#allocation2 + $0x3f0] ss:$28 sps:$4 sm:$0xff]   ;;  %v2481_v47 = vld [vmem:[#allocation2 + $0x468] ss:$28 sps:$4 sm:$0xff]  }
  0x9c   :  { %v179_v5 = vadd.f32 %v171_v53, %v119_v1  ;;  %v184_v17 = vmax.f32 %v176_v62, 0.0  ;;  %v183_v18 = vmax.f32 %v175_v63, 0.0  ;;  %v185_v24 = vmax.f32 %v177_v0, 0.0  ;;  %v2469_v39 = vld [vmem:[#allocation2 + $0x3f8] ss:$28 sps:$4 sm:$0xff]  }
  0x9d   :  { %v180_v6 = vadd.f32 %v172_v54, %v120_v2  ;;  %v181_v14 = vadd.f32 %v173_v55, %v121_v3  ;;  %v182_v16 = vadd.f32 %v174_v61, %v122_v4  ;;  %v186_v31 = vmax.f32 %v178_v19, 0.0  ;;  %v2474_v40 = vld [vmem:[#allocation2 + $0x42c] ss:$28 sps:$4 sm:$0xff]   ;;  %v2478_v46 = vld [vmem:[#allocation2 + $0x460] ss:$28 sps:$4 sm:$0xff]  }
  0x9e   :  { %v187_v20 = vmax.f32 %v179_v5, 0.0  ;;  %v2486_v48 = vld [vmem:[#allocation2 + $0x49c] ss:$28 sps:$4 sm:$0xff]   ;;  %v2489_v49 = vld [vmem:[#allocation2 + $0x4a4] ss:$28 sps:$4 sm:$0xff]  }
  0x9f   :  { %v188_v21 = vmax.f32 %v180_v6, 0.0  ;;  %v189_v22 = vmax.f32 %v181_v14, 0.0  ;;  %v190_v25 = vmax.f32 %v182_v16, 0.0  ;;  %v2484_v50 = vld [vmem:[#allocation2 + $0x498] ss:$28 sps:$4 sm:$0xff]  }
  0xa0   :  { %v2831_v28 = vpack.c.bf16 %v187_v20, %v183_v18  ;;  %v2487_v51 = vld [vmem:[#allocation2 + $0x4a0] ss:$28 sps:$4 sm:$0xff]   ;;  %v2490_v54 = vld [vmem:[#allocation2 + $0x4d0] ss:$28 sps:$4 sm:$0xff]   ;;  %v2493_v55 = vld [vmem:[#allocation2 + $0x4d8] ss:$28 sps:$4 sm:$0xff]  }
  0xa1   :  { %v2829_v27 = vpack.c.bf16 %v188_v21, %v184_v17  ;;  %v2833_v30 = vpack.c.bf16 %v189_v22, %v185_v24  ;;  %v2839_v34 = vpack.c.bf16 %v190_v25, %v186_v31  ;;  %v2495_v53 = vld [vmem:[#allocation2 + $0x4dc] ss:$28 sps:$4 sm:$0xff]   ;;  %v2498_v56 = vld [vmem:[#allocation2 + $0x50c] ss:$28 sps:$4 sm:$0xff]   ;;  %v2501_v57 = vld [vmem:[#allocation2 + $0x514] ss:$28 sps:$4 sm:$0xff]  }
  0xa2   :  { %v2496_v58 = vld [vmem:[#allocation2 + $0x508] ss:$28 sps:$4 sm:$0xff]   ;;  %v2499_v59 = vld [vmem:[#allocation2 + $0x510] ss:$28 sps:$4 sm:$0xff]   ;;  %v2502_v62 = vld [vmem:[#allocation2 + $0x540] ss:$28 sps:$4 sm:$0xff]  }
  0xa3   :  { %1635 = vmatprep.mubr.bf16.mxu0 %v2829_v27  ;;  %1721 = vmatprep.mubr.bf16.mxu1 %v2829_v27  ;;  %v2504_v60 = vld [vmem:[#allocation2 + $0x544] ss:$28 sps:$4 sm:$0xff]   ;;  %v2507_v61 = vld [vmem:[#allocation2 + $0x54c] ss:$28 sps:$4 sm:$0xff]   ;;  %v2510_v0 = vld [vmem:[#allocation2 + $0x57c] ss:$28 sps:$4 sm:$0xff]  }
  0xa4   :  { %1636 = vmatmul.mubr.bf16.vlgmr.msra.gmra.mrb[0].mxu0 %v2831_v28  ;;  %1722 = vmatmul.mubr.bf16.vlgmr.msra.gmra.mrb[0].mxu1 %v2831_v28  ;;  %v2505_v63 = vld [vmem:[#allocation2 + $0x548] ss:$28 sps:$4 sm:$0xff]   ;;  %v2508_v2 = vld [vmem:[#allocation2 + $0x578] ss:$28 sps:$4 sm:$0xff]   ;;  %v2511_v3 = vld [vmem:[#allocation2 + $0x580] ss:$28 sps:$4 sm:$0xff]  }
  0xa5   :  { %1647 = vmatpush1.bf16.msra.mxu0 %v2454_v23  ;;  %1733 = vmatpush1.bf16.msra.mxu1 %v2457_v26  ;;  %v2513_v1 = vld [vmem:[#allocation2 + $0x584] ss:$28 sps:$4 sm:$0xff]   ;;  %v2516_v4 = vld [vmem:[#allocation2 + $0x5b4] ss:$28 sps:$4 sm:$0xff]   ;;  %v2519_v5 = vld [vmem:[#allocation2 + $0x5bc] ss:$28 sps:$4 sm:$0xff]  }
  0xa6   :  { %1678 = vmatprep.mubr.bf16.mxu0 %v2839_v34  ;;  %1764 = vmatprep.mubr.bf16.mxu1 %v2839_v34  ;;  %v2514_v6 = vld [vmem:[#allocation2 + $0x5b0] ss:$28 sps:$4 sm:$0xff]   ;;  %v2517_v14 = vld [vmem:[#allocation2 + $0x5b8] ss:$28 sps:$4 sm:$0xff]   ;;  %v2520_v18 = vld [vmem:[#allocation2 + $0x5e8] ss:$28 sps:$4 sm:$0xff]  }
  0xa7   :  { %1648 = vmatprep.subr.bf16.mxu0 %v2462_v29  ;;  %1734 = vmatprep.subr.bf16.mxu1 %v2465_v33  ;;  %v2522_v16 = vld [vmem:[#allocation2 + $0x5ec] ss:$28 sps:$4 sm:$0xff]   ;;  %v2525_v17 = vld [vmem:[#allocation2 + $0x5f4] ss:$28 sps:$4 sm:$0xff]   ;;  %v2528_v20 = vld [vmem:[#allocation2 + $0x624] ss:$28 sps:$4 sm:$0xff]  }
  0xa8   :  { %v2523_v19 = vld [vmem:[#allocation2 + $0x5f0] ss:$28 sps:$4 sm:$0xff]   ;;  %v2526_v22 = vld [vmem:[#allocation2 + $0x620] ss:$28 sps:$4 sm:$0xff]   ;;  %v2529_v23 = vld [vmem:[#allocation2 + $0x628] ss:$28 sps:$4 sm:$0xff]  }
  0xa9   :  { %1649 = vmatpush1.bf16.msra.mxu0 %v2460_v32  ;;  %1735 = vmatpush1.bf16.msra.mxu1 %v2463_v35  ;;  %v2531_v21 = vld [vmem:[#allocation2 + $0x62c] ss:$28 sps:$4 sm:$0xff]   ;;  %v2534_v24 = vld [vmem:[#allocation2 + $0x65c] ss:$28 sps:$4 sm:$0xff]   ;;  %v2537_v25 = vld [vmem:[#allocation2 + $0x664] ss:$28 sps:$4 sm:$0xff]  }
  0xaa   :  { %1650 = vmatprep.subr.bf16.mxu0 %v2468_v36  ;;  %1736 = vmatprep.subr.bf16.mxu1 %v2471_v37  ;;  %v2532_v26 = vld [vmem:[#allocation2 + $0x658] ss:$28 sps:$4 sm:$0xff]   ;;  %v2535_v29 = vld [vmem:[#allocation2 + $0x660] ss:$28 sps:$4 sm:$0xff]   ;;  %v2538_v33 = vld [vmem:[#allocation2 + $0x690] ss:$28 sps:$4 sm:$0xff]  }
  0xab   :  { %v2540_v31 = vld [vmem:[#allocation2 + $0x694] ss:$28 sps:$4 sm:$0xff]   ;;  %v2543_v32 = vld [vmem:[#allocation2 + $0x69c] ss:$28 sps:$4 sm:$0xff]   ;;  %v2546_v36 = vld [vmem:[#allocation2 + $0x6cc] ss:$28 sps:$4 sm:$0xff]  }
  0xac   :  { %v2541_v35 = vld [vmem:[#allocation2 + $0x698] ss:$28 sps:$4 sm:$0xff]  }
  0xad   :  { %1651 = vmatpush1.bf16.msra.mxu0 %v2466_v38  ;;  %1737 = vmatpush1.bf16.msra.mxu1 %v2469_v39  ;;  %v2549_v37 = vld [vmem:[#allocation2 + $0x6d4] ss:$28 sps:$4 sm:$0xff]   ;;  %v2544_v38 = vld [vmem:[#allocation2 + $0x6c8] ss:$28 sps:$4 sm:$0xff]  }
  0xae   :  { %1652 = vmatprep.subr.bf16.mxu0 %v2474_v40  ;;  %1738 = vmatprep.subr.bf16.mxu1 %v2477_v41  ;;  %v2547_v39 = vld [vmem:[#allocation2 + $0x6d0] ss:$28 sps:$4 sm:$0xff]   ;;  %v2553_v41 = vld [vmem:[#allocation2 + $0x1d8] ss:$28 sps:$4 sm:$0xff]  }
  0xaf   :  { %v2552_v40 = vld [vmem:[#allocation2 + $0x14] ss:$28 sps:$4 sm:$0xff]  }
  0xb1   :  { %1653 = vmatpush1.bf16.msra.mxu0 %v2472_v42  ;;  %1739 = vmatpush1.bf16.msra.mxu1 %v2475_v43  ;;  %v2550_v42 = vld [vmem:[#allocation2 + $0x10] ss:$28 sps:$4 sm:$0xff]   ;;  %v2554_v43 = vld [vmem:[#allocation2 + $0x18] ss:$28 sps:$4 sm:$0xff]  }
  0xb2   :  { %1654 = vmatprep.subr.bf16.mxu0 %v2480_v44  ;;  %1740 = vmatprep.subr.bf16.mxu1 %v2483_v45  ;;  %v2557_v44 = vld [vmem:[#allocation2 + $0x4c] ss:$28 sps:$4 sm:$0xff]  }
  0xb3   :  { %v2558_v45 = vld [vmem:[#allocation2 + $0x210] ss:$28 sps:$4 sm:$0xff]  }
  0xb5   :  { %1655 = vmatpush1.bf16.msra.mxu0 %v2478_v46  ;;  %1741 = vmatpush1.bf16.msra.mxu1 %v2481_v47  ;;  %v2555_v46 = vld [vmem:[#allocation2 + $0x48] ss:$28 sps:$4 sm:$0xff]   ;;  %v2559_v47 = vld [vmem:[#allocation2 + $0x50] ss:$28 sps:$4 sm:$0xff]  }
  0xb6   :  { %1656 = vmatprep.subr.bf16.mxu0 %v2486_v48  ;;  %1742 = vmatprep.subr.bf16.mxu1 %v2489_v49  ;;  %v2562_v48 = vld [vmem:[#allocation2 + $0x84] ss:$28 sps:$4 sm:$0xff]  }
  0xb7   :  { %v2563_v49 = vld [vmem:[#allocation2 + $0x248] ss:$28 sps:$4 sm:$0xff]  }
  0xb9   :  { %1657 = vmatpush1.bf16.msra.mxu0 %v2484_v50  ;;  %1743 = vmatpush1.bf16.msra.mxu1 %v2487_v51  ;;  %v2560_v50 = vld [vmem:[#allocation2 + $0x80] ss:$28 sps:$4 sm:$0xff]   ;;  %v2564_v51 = vld [vmem:[#allocation2 + $0x88] ss:$28 sps:$4 sm:$0xff]  }
  0xba   :  { %1658 = vmatprep.subr.bf16.mxu0 %v2492_v52  ;;  %1744 = vmatprep.subr.bf16.mxu1 %v2495_v53  ;;  %v2567_v52 = vld [vmem:[#allocation2 + $0xbc] ss:$28 sps:$4 sm:$0xff]  }
  0xbb   :  { %v2568_v53 = vld [vmem:[#allocation2 + $0x280] ss:$28 sps:$4 sm:$0xff]  }
  0xbd   :  { %1659 = vmatpush1.bf16.msra.mxu0 %v2490_v54  ;;  %1745 = vmatpush1.bf16.msra.mxu1 %v2493_v55  ;;  %v2565_v54 = vld [vmem:[#allocation2 + $0xb8] ss:$28 sps:$4 sm:$0xff]   ;;  %v2569_v55 = vld [vmem:[#allocation2 + $0xc0] ss:$28 sps:$4 sm:$0xff]  }
  0xbe   :  { %1660 = vmatprep.subr.bf16.mxu0 %v2498_v56  ;;  %1746 = vmatprep.subr.bf16.mxu1 %v2501_v57  ;;  %v2572_v56 = vld [vmem:[#allocation2 + $0xf4] ss:$28 sps:$4 sm:$0xff]  }
  0xbf   :  { %v2570_v57 = vld [vmem:[#allocation2 + $0xf0] ss:$28 sps:$4 sm:$0xff]  }
  0xc1   :  { %1661 = vmatpush1.bf16.msra.mxu0 %v2496_v58  ;;  %1747 = vmatpush1.bf16.msra.mxu1 %v2499_v59  ;;  %v2574_v58 = vld [vmem:[#allocation2 + $0xf8] ss:$28 sps:$4 sm:$0xff]   ;;  %v2577_v59 = vld [vmem:[#allocation2 + $0x12c] ss:$28 sps:$4 sm:$0xff]  }
  0xc2   :  { %1662 = vmatprep.subr.bf16.mxu0 %v2504_v60  ;;  %1748 = vmatprep.subr.bf16.mxu1 %v2507_v61  ;;  %v2578_v60 = vld [vmem:[#allocation2 + $0x2f0] ss:$28 sps:$4 sm:$0xff]   ;;  %v2575_v61 = vld [vmem:[#allocation2 + $0x128] ss:$28 sps:$4 sm:$0xff]  }
  0xc5   :  { %1663 = vmatpush1.bf16.msra.mxu0 %v2502_v62  ;;  %1749 = vmatpush1.bf16.msra.mxu1 %v2505_v63  ;;  %v2579_v62 = vld [vmem:[#allocation2 + $0x130] ss:$28 sps:$4 sm:$0xff]   ;;  %v2582_v63 = vld [vmem:[#allocation2 + $0x164] ss:$28 sps:$4 sm:$0xff]  }
  0xc6   :  { %1664 = vmatprep.subr.bf16.mxu0 %v2510_v0  ;;  %1750 = vmatprep.subr.bf16.mxu1 %v2513_v1  ;;  %v2583_v0 = vld [vmem:[#allocation2 + $0x328] ss:$28 sps:$4 sm:$0xff]   ;;  %v2580_v1 = vld [vmem:[#allocation2 + $0x160] ss:$28 sps:$4 sm:$0xff]  }
  0xc9   :  { %1665 = vmatpush1.bf16.msra.mxu0 %v2508_v2  ;;  %1751 = vmatpush1.bf16.msra.mxu1 %v2511_v3  ;;  %v2584_v2 = vld [vmem:[#allocation2 + $0x168] ss:$28 sps:$4 sm:$0xff]   ;;  %v2587_v3 = vld [vmem:[#allocation2 + $0x19c] ss:$28 sps:$4 sm:$0xff]  }
  0xca   :  { %1666 = vmatprep.subr.bf16.mxu0 %v2516_v4  ;;  %1752 = vmatprep.subr.bf16.mxu1 %v2519_v5  ;;  %v2588_v4 = vld [vmem:[#allocation2 + $0x360] ss:$28 sps:$4 sm:$0xff]   ;;  %v2585_v5 = vld [vmem:[#allocation2 + $0x198] ss:$28 sps:$4 sm:$0xff]  }
  0xcd   :  { %1667 = vmatpush1.bf16.msra.mxu0 %v2514_v6  ;;  %1753 = vmatpush1.bf16.msra.mxu1 %v2517_v14  ;;  %v2589_v6 = vld [vmem:[#allocation2 + $0x1a0] ss:$28 sps:$4 sm:$0xff]   ;;  %v2592_v14 = vld [vmem:[#allocation2 + $0x1d4] ss:$28 sps:$4 sm:$0xff]  }
  0xce   :  { %1668 = vmatprep.subr.bf16.mxu0 %v2522_v16  ;;  %1754 = vmatprep.subr.bf16.mxu1 %v2525_v17  ;;  %v2593_v16 = vld [vmem:[#allocation2 + $0x558] ss:$28 sps:$4 sm:$0xff]   ;;  %v2590_v17 = vld [vmem:[#allocation2 + $0x1d0] ss:$28 sps:$4 sm:$0xff]  }
  0xd1   :  { %1669 = vmatpush1.bf16.msra.mxu0 %v2520_v18  ;;  %1755 = vmatpush1.bf16.msra.mxu1 %v2523_v19  ;;  %v2594_v18 = vld [vmem:[#allocation2 + $0x398] ss:$28 sps:$4 sm:$0xff]   ;;  %v2597_v19 = vld [vmem:[#allocation2 + $0x20c] ss:$28 sps:$4 sm:$0xff]  }
  0xd2   :  { %1670 = vmatprep.subr.bf16.mxu0 %v2528_v20  ;;  %1756 = vmatprep.subr.bf16.mxu1 %v2531_v21  ;;  %v2598_v20 = vld [vmem:[#allocation2 + $0x590] ss:$28 sps:$4 sm:$0xff]   ;;  %v2595_v21 = vld [vmem:[#allocation2 + $0x208] ss:$28 sps:$4 sm:$0xff]  }
  0xd5   :  { %1671 = vmatpush1.bf16.msra.mxu0 %v2526_v22  ;;  %1757 = vmatpush1.bf16.msra.mxu1 %v2529_v23  ;;  %v2599_v22 = vld [vmem:[#allocation2 + $0x3d0] ss:$28 sps:$4 sm:$0xff]   ;;  %v2602_v23 = vld [vmem:[#allocation2 + $0x244] ss:$28 sps:$4 sm:$0xff]  }
  0xd6   :  { %1672 = vmatprep.subr.bf16.mxu0 %v2534_v24  ;;  %1758 = vmatprep.subr.bf16.mxu1 %v2537_v25  ;;  %v2603_v24 = vld [vmem:[#allocation2 + $0x5c8] ss:$28 sps:$4 sm:$0xff]   ;;  %v2600_v25 = vld [vmem:[#allocation2 + $0x240] ss:$28 sps:$4 sm:$0xff]  }
  0xd9   :  { %1673 = vmatpush1.bf16.msra.mxu0 %v2532_v26  ;;  %1759 = vmatpush1.bf16.msra.mxu1 %v2535_v29  ;;  %v2604_v26 = vld [vmem:[#allocation2 + $0x408] ss:$28 sps:$4 sm:$0xff]   ;;  %v2607_v29 = vld [vmem:[#allocation2 + $0x27c] ss:$28 sps:$4 sm:$0xff]  }
  0xda   :  { %1674 = vmatprep.subr.bf16.mxu0 %v2540_v31  ;;  %1760 = vmatprep.subr.bf16.mxu1 %v2543_v32  ;;  %v2608_v31 = vld [vmem:[#allocation2 + $0x600] ss:$28 sps:$4 sm:$0xff]   ;;  %v2605_v32 = vld [vmem:[#allocation2 + $0x278] ss:$28 sps:$4 sm:$0xff]  }
  0xdd   :  { %1675 = vmatpush1.bf16.msra.mxu0 %v2538_v33  ;;  %1761 = vmatpush1.bf16.msra.mxu1 %v2541_v35  ;;  %v2609_v33 = vld [vmem:[#allocation2 + $0x440] ss:$28 sps:$4 sm:$0xff]   ;;  %v2612_v35 = vld [vmem:[#allocation2 + $0x2b4] ss:$28 sps:$4 sm:$0xff]  }
  0xde   :  { %1676 = vmatprep.subr.bf16.mxu0 %v2546_v36  ;;  %1762 = vmatprep.subr.bf16.mxu1 %v2549_v37  ;;  %v2613_v36 = vld [vmem:[#allocation2 + $0x638] ss:$28 sps:$4 sm:$0xff]   ;;  %v2610_v37 = vld [vmem:[#allocation2 + $0x2b0] ss:$28 sps:$4 sm:$0xff]  }
  0xe1   :  { %1677 = vmatpush1.bf16.msra.mxu0 %v2544_v38  ;;  %1763 = vmatpush1.bf16.msra.mxu1 %v2547_v39  ;;  %v2614_v38 = vld [vmem:[#allocation2 + $0x478] ss:$28 sps:$4 sm:$0xff]   ;;  %v2617_v39 = vld [vmem:[#allocation2 + $0x2ec] ss:$28 sps:$4 sm:$0xff]  }
  0xe2   :  { %1775 = vmatprep.subr.bf16.mxu0 %v2552_v40  ;;  %2294 = vmatprep.subr.bf16.mxu1 %v2553_v41  ;;  %v2618_v40 = vld [vmem:[#allocation2 + $0x670] ss:$28 sps:$4 sm:$0xff]   ;;  %v2615_v41 = vld [vmem:[#allocation2 + $0x2e8] ss:$28 sps:$4 sm:$0xff]  }
  0xe4   :  { %1679 = vmatmul.mubr.bf16.vlgmr.msra.gmra.mrb[0].mxu0 %v2833_v30  ;;  %1765 = vmatmul.mubr.bf16.vlgmr.msra.gmra.mrb[0].mxu1 %v2833_v30 }
  0xe5   :  { %1776 = vmatpush1.bf16.msra.mxu0 %v2550_v42  ;;  %1807 = vmatprep.mubr.bf16.mxu0 %v2829_v27  ;;  %v2619_v42 = vld [vmem:[#allocation2 + $0x4b0] ss:$28 sps:$4 sm:$0xff]  }
  0xe6   :  { %2295 = vmatpush3.bf16.msra.mxu1 %v2554_v43  ;;  %1893 = vmatprep.mubr.bf16.mxu1 %v2829_v27  ;;  %v2573_v27 = vld [vmem:[#allocation2 + $0x2b8] ss:$28 sps:$4 sm:$0xff]   ;;  %v2622_v43 = vld [vmem:[#allocation2 + $0x324] ss:$28 sps:$4 sm:$0xff]  }
  0xe7   :  { %1777 = vmatprep.subr.bf16.mxu0 %v2557_v44  ;;  %2296 = vmatprep.subr.bf16.mxu1 %v2558_v45  ;;  %v2623_v44 = vld [vmem:[#allocation2 + $0x6a8] ss:$28 sps:$4 sm:$0xff]   ;;  %v2620_v45 = vld [vmem:[#allocation2 + $0x320] ss:$28 sps:$4 sm:$0xff]  }
  0xe9   :  { %1778 = vmatpush1.bf16.msra.mxu0 %v2555_v46  ;;  %v2624_v46 = vld [vmem:[#allocation2 + $0x4e8] ss:$28 sps:$4 sm:$0xff]  }
  0xea   :  { %2297 = vmatpush3.bf16.msra.mxu1 %v2559_v47  ;;  %1779 = vmatprep.subr.bf16.mxu0 %v2562_v48  ;;  %v2627_v47 = vld [vmem:[#allocation2 + $0x35c] ss:$28 sps:$4 sm:$0xff]  }
  0xeb   :  { %2298 = vmatprep.subr.bf16.mxu1 %v2563_v49  ;;  %v2628_v48 = vld [vmem:[#allocation2 + $0x6e0] ss:$28 sps:$4 sm:$0xff]   ;;  %v2625_v49 = vld [vmem:[#allocation2 + $0x358] ss:$28 sps:$4 sm:$0xff]  }
  0xed   :  { %1780 = vmatpush1.bf16.msra.mxu0 %v2560_v50  ;;  %v2629_v50 = vld [vmem:[#allocation2 + $0x520] ss:$28 sps:$4 sm:$0xff]  }
  0xee   :  { %2299 = vmatpush3.bf16.msra.mxu1 %v2564_v51  ;;  %1781 = vmatprep.subr.bf16.mxu0 %v2567_v52  ;;  %v2632_v51 = vld [vmem:[#allocation2 + $0x394] ss:$28 sps:$4 sm:$0xff]  }
  0xef   :  { %2300 = vmatprep.subr.bf16.mxu1 %v2568_v53  ;;  %v2630_v52 = vld [vmem:[#allocation2 + $0x390] ss:$28 sps:$4 sm:$0xff]  }
  0xf0   :  { %v2635_v53 = vld [vmem:[#allocation2 + $0x3cc] ss:$28 sps:$4 sm:$0xff]  }
  0xf1   :  { %1782 = vmatpush1.bf16.msra.mxu0 %v2565_v54  ;;  %v2633_v54 = vld [vmem:[#allocation2 + $0x3c8] ss:$28 sps:$4 sm:$0xff]  }
  0xf2   :  { %2301 = vmatpush3.bf16.msra.mxu1 %v2569_v55  ;;  %1783 = vmatprep.subr.bf16.mxu0 %v2572_v56  ;;  %v2638_v55 = vld [vmem:[#allocation2 + $0x404] ss:$28 sps:$4 sm:$0xff]  }
  0xf3   :  { %2302 = vmatprep.subr.bf16.mxu1 %v2573_v27  ;;  %v2636_v56 = vld [vmem:[#allocation2 + $0x400] ss:$28 sps:$4 sm:$0xff]  }
  0xf4   :  { %v2641_v27 = vld [vmem:[#allocation2 + $0x43c] ss:$28 sps:$4 sm:$0xff]  }
  0xf5   :  { %1784 = vmatpush1.bf16.msra.mxu0 %v2570_v57  ;;  %v2639_v57 = vld [vmem:[#allocation2 + $0x438] ss:$28 sps:$4 sm:$0xff]  }
  0xf6   :  { %2303 = vmatpush3.bf16.msra.mxu1 %v2574_v58  ;;  %1785 = vmatprep.subr.bf16.mxu0 %v2577_v59  ;;  %v2644_v58 = vld [vmem:[#allocation2 + $0x474] ss:$28 sps:$4 sm:$0xff]  }
  0xf7   :  { %2304 = vmatprep.subr.bf16.mxu1 %v2578_v60  ;;  %v2642_v59 = vld [vmem:[#allocation2 + $0x470] ss:$28 sps:$4 sm:$0xff]   ;;  %v2645_v60 = vld [vmem:[#allocation2 + $0x4a8] ss:$28 sps:$4 sm:$0xff]  }
  0xf9   :  { %1786 = vmatpush1.bf16.msra.mxu0 %v2575_v61  ;;  %v2650_v61 = vld [vmem:[#allocation2 + $0x4e4] ss:$28 sps:$4 sm:$0xff]  }
  0xfa   :  { %2305 = vmatpush3.bf16.msra.mxu1 %v2579_v62  ;;  %1787 = vmatprep.subr.bf16.mxu0 %v2582_v63  ;;  %v2653_v62 = vld [vmem:[#allocation2 + $0x51c] ss:$28 sps:$4 sm:$0xff]  }
  0xfb   :  { %2306 = vmatprep.subr.bf16.mxu1 %v2583_v0  ;;  %v2651_v63 = vld [vmem:[#allocation2 + $0x518] ss:$28 sps:$4 sm:$0xff]  }
  0xfc   :  { %v2656_v0 = vld [vmem:[#allocation2 + $0x554] ss:$28 sps:$4 sm:$0xff]  }
  0xfd   :  { %1788 = vmatpush1.bf16.msra.mxu0 %v2580_v1  ;;  %v2654_v1 = vld [vmem:[#allocation2 + $0x550] ss:$28 sps:$4 sm:$0xff]  }
  0xfe   :  { %2307 = vmatpush3.bf16.msra.mxu1 %v2584_v2  ;;  %1789 = vmatprep.subr.bf16.mxu0 %v2587_v3  ;;  %v2659_v2 = vld [vmem:[#allocation2 + $0x58c] ss:$28 sps:$4 sm:$0xff]  }
  0xff   :  { %2308 = vmatprep.subr.bf16.mxu1 %v2588_v4  ;;  %v2657_v3 = vld [vmem:[#allocation2 + $0x588] ss:$28 sps:$4 sm:$0xff]  }
 0x100   :  { %v2662_v4 = vld [vmem:[#allocation2 + $0x5c4] ss:$28 sps:$4 sm:$0xff]  }
 0x101   :  { %1790 = vmatpush1.bf16.msra.mxu0 %v2585_v5  ;;  %v2660_v5 = vld [vmem:[#allocation2 + $0x5c0] ss:$28 sps:$4 sm:$0xff]  }
 0x102   :  { %2309 = vmatpush3.bf16.msra.mxu1 %v2589_v6  ;;  %1791 = vmatprep.subr.bf16.mxu0 %v2592_v14  ;;  %v2665_v6 = vld [vmem:[#allocation2 + $0x5fc] ss:$28 sps:$4 sm:$0xff]  }
 0x103   :  { %2316 = vmatprep.subr.bf16.mxu1 %v2593_v16  ;;  %v2663_v14 = vld [vmem:[#allocation2 + $0x5f8] ss:$28 sps:$4 sm:$0xff]  }
 0x104   :  { %v2668_v16 = vld [vmem:[#allocation2 + $0x634] ss:$28 sps:$4 sm:$0xff]  }
 0x105   :  { %1894 = vmatmul.mubr.bf16.vlgmr.msra.gmra.mrb[4].mxu1 %v2831_v28  ;;  %1792 = vmatpush1.bf16.msra.mxu0 %v2590_v17  ;;  %v2666_v17 = vld [vmem:[#allocation2 + $0x630] ss:$28 sps:$4 sm:$0xff]  }
 0x106   :  { %2317 = vmatpush3.bf16.msra.mxu1 %v2594_v18  ;;  %1934 = vmatprep.mubr.bf16.mxu1 %v2839_v34  ;;  %v2671_v18 = vld [vmem:[#allocation2 + $0x66c] ss:$28 sps:$4 sm:$0xff]  }
 0x107   :  { %1793 = vmatprep.subr.bf16.mxu0 %v2597_v19  ;;  %2318 = vmatprep.subr.bf16.mxu1 %v2598_v20  ;;  %v2669_v19 = vld [vmem:[#allocation2 + $0x668] ss:$28 sps:$4 sm:$0xff]  }
 0x108   :  { %v2674_v20 = vld [vmem:[#allocation2 + $0x6a4] ss:$28 sps:$4 sm:$0xff]  }
 0x109   :  { %1794 = vmatpush1.bf16.msra.mxu0 %v2595_v21  ;;  %v2672_v21 = vld [vmem:[#allocation2 + $0x6a0] ss:$28 sps:$4 sm:$0xff]  }
 0x10a   :  { %2319 = vmatpush3.bf16.msra.mxu1 %v2599_v22  ;;  %1795 = vmatprep.subr.bf16.mxu0 %v2602_v23  ;;  %v2677_v22 = vld [vmem:[#allocation2 + $0x6dc] ss:$28 sps:$4 sm:$0xff]  }
 0x10b   :  { %2320 = vmatprep.subr.bf16.mxu1 %v2603_v24  ;;  %v2675_v23 = vld [vmem:[#allocation2 + $0x6d8] ss:$28 sps:$4 sm:$0xff]   ;;  %v2856_v24 = vld [vmem:[%s2921_s4] sm:$0x7f] }
 0x10d   :  { %1796 = vmatpush1.bf16.msra.mxu0 %v2600_v25  ;;  %v1948_v25 = vrot.slane %v2856_v24, %v2790_v10 }
 0x10e   :  { %2321 = vmatpush3.bf16.msra.mxu1 %v2604_v26  ;;  %1797 = vmatprep.subr.bf16.mxu0 %v2607_v29  ;;  %v1956_v26 = vrot.slane %v2856_v24, %v2793_v11  ;;  %v1952_v29 = vrot.slane %v2856_v24, %v2786_v8 }
 0x10f   :  { %2322 = vmatprep.subr.bf16.mxu1 %v2608_v31  ;;  %v1960_v31 = vrot.slane %v2856_v24, %v2801_v15 }
 0x111   :  { %1798 = vmatpush1.bf16.msra.mxu0 %v2605_v32 }
 0x112   :  { %2323 = vmatpush3.bf16.msra.mxu1 %v2609_v33  ;;  %1799 = vmatprep.subr.bf16.mxu0 %v2612_v35 }
 0x113   :  { %2324 = vmatprep.subr.bf16.mxu1 %v2613_v36 }
 0x115   :  { %1800 = vmatpush1.bf16.msra.mxu0 %v2610_v37 }
 0x116   :  { %2325 = vmatpush3.bf16.msra.mxu1 %v2614_v38  ;;  %1801 = vmatprep.subr.bf16.mxu0 %v2617_v39 }
 0x117   :  { %2326 = vmatprep.subr.bf16.mxu1 %v2618_v40 }
 0x119   :  { %1802 = vmatpush1.bf16.msra.mxu0 %v2615_v41 }
 0x11a   :  { %2327 = vmatpush3.bf16.msra.mxu1 %v2619_v42  ;;  %1803 = vmatprep.subr.bf16.mxu0 %v2622_v43 }
 0x11b   :  { %2328 = vmatprep.subr.bf16.mxu1 %v2623_v44 }
 0x11d   :  { %1804 = vmatpush1.bf16.msra.mxu0 %v2620_v45 }
 0x11e   :  { %2329 = vmatpush3.bf16.msra.mxu1 %v2624_v46  ;;  %1805 = vmatprep.subr.bf16.mxu0 %v2627_v47 }
 0x11f   :  { %2330 = vmatprep.subr.bf16.mxu1 %v2628_v48 }
 0x121   :  { %1806 = vmatpush1.bf16.msra.mxu0 %v2625_v49 }
 0x122   :  { %2331 = vmatpush3.bf16.msra.mxu1 %v2629_v50  ;;  %1818 = vmatprep.subr.bf16.mxu0 %v2632_v51 }
 0x124   :  { %1808 = vmatmul.mubr.bf16.vlgmr.msra.gmra.mrb[4].mxu0 %v2831_v28  ;;  %v2647_v28 = vld [vmem:[#allocation2 + $0x4ac] ss:$28 sps:$4 sm:$0xff]  }
 0x125   :  { %1935 = vmatmul.mubr.bf16.vlgmr.msra.gmra.mrb[8].mxu1 %v2833_v30  ;;  %1819 = vmatpush1.bf16.msra.mxu0 %v2630_v52 }
 0x126   :  { %1850 = vmatprep.mubr.bf16.mxu0 %v2839_v34  ;;  %1820 = vmatprep.subr.bf16.mxu0 %v2635_v53  ;;  %v2648_v34 = vld [vmem:[#allocation2 + $0x4e0] ss:$28 sps:$4 sm:$0xff]  }
 0x129   :  { %1821 = vmatpush1.bf16.msra.mxu0 %v2633_v54 }
 0x12a   :  { %1822 = vmatprep.subr.bf16.mxu0 %v2638_v55 }
 0x12d   :  { %1823 = vmatpush1.bf16.msra.mxu0 %v2636_v56 }
 0x12e   :  { %1824 = vmatprep.subr.bf16.mxu0 %v2641_v27 }
 0x131   :  { %1825 = vmatpush1.bf16.msra.mxu0 %v2639_v57 }
 0x132   :  { %1826 = vmatprep.subr.bf16.mxu0 %v2644_v58 }
 0x135   :  { %1827 = vmatpush1.bf16.msra.mxu0 %v2642_v59 }
 0x136   :  { %1828 = vmatprep.subr.bf16.mxu0 %v2647_v28 }
 0x139   :  { %1829 = vmatpush1.bf16.msra.mxu0 %v2645_v60 }
 0x13a   :  { %1830 = vmatprep.subr.bf16.mxu0 %v2650_v61 }
 0x13d   :  { %1831 = vmatpush1.bf16.msra.mxu0 %v2648_v34 }
 0x13e   :  { %1832 = vmatprep.subr.bf16.mxu0 %v2653_v62 }
 0x141   :  { %1833 = vmatpush1.bf16.msra.mxu0 %v2651_v63 }
 0x142   :  { %1834 = vmatprep.subr.bf16.mxu0 %v2656_v0 }
 0x145   :  { %1835 = vmatpush1.bf16.msra.mxu0 %v2654_v1 }
 0x146   :  { %1836 = vmatprep.subr.bf16.mxu0 %v2659_v2 }
 0x149   :  { %1837 = vmatpush1.bf16.msra.mxu0 %v2657_v3 }
 0x14a   :  { %1838 = vmatprep.subr.bf16.mxu0 %v2662_v4 }
 0x14d   :  { %1839 = vmatpush1.bf16.msra.mxu0 %v2660_v5 }
 0x14e   :  { %1840 = vmatprep.subr.bf16.mxu0 %v2665_v6 }
 0x151   :  { %1841 = vmatpush1.bf16.msra.mxu0 %v2663_v14 }
 0x152   :  { %1842 = vmatprep.subr.bf16.mxu0 %v2668_v16 }
 0x155   :  { %1843 = vmatpush1.bf16.msra.mxu0 %v2666_v17 }
 0x156   :  { %1844 = vmatprep.subr.bf16.mxu0 %v2671_v18 }
 0x159   :  { %1845 = vmatpush1.bf16.msra.mxu0 %v2669_v19 }
 0x15a   :  { %1846 = vmatprep.subr.bf16.mxu0 %v2674_v20 }
 0x15d   :  { %1847 = vmatpush1.bf16.msra.mxu0 %v2672_v21 }
 0x15e   :  { %1848 = vmatprep.subr.bf16.mxu0 %v2677_v22 }
 0x161   :  { %1849 = vmatpush1.bf16.msra.mxu0 %v2675_v23 }
 0x164   :  { %1851 = vmatmul.mubr.bf16.vlgmr.msra.gmra.mrb[4].mxu0 %v2833_v30 }
 0x1b7   :  { %v1680_v32 = vpop.f32.mrb[0].mxu0  ;;  %v1766_v33 = vpop.f32.mrb[0].mxu1 }
 0x1b8   :  { %v1980_v30 = vadd.f32 %v1948_v25, %v1680_v32  ;;  %v1982_v35 = vadd.f32 %v1956_v26, %v1766_v33  ;;  %v1682_v36 = vpop.f32.mrb[1].mxu0  ;;  %v1768_v37 = vpop.f32.mrb[1].mxu1 }
 0x1b9   :  { %v1981_v38 = vadd.f32 %v1952_v29, %v1682_v36  ;;  %v1983_v39 = vadd.f32 %v1960_v31, %v1768_v37  ;;  %v1684_v40 = vpop.f32.mrb[2].mxu0  ;;  %v1770_v41 = vpop.f32.mrb[2].mxu1 }
 0x1ba   :  { %v1994_v10 = vmul.f32 0.5, %v1980_v30  ;;  %v1996_v42 = vmul.f32 0.5, %v1982_v35  ;;  %v1987_v43 = vadd.f32 %v1948_v25, %v1684_v40  ;;  %v1989_v11 = vadd.f32 %v1956_v26, %v1770_v41  ;;  %v1686_v44 = vpop.f32.mrb[3].mxu0  ;;  %v1772_v45 = vpop.f32.mrb[3].mxu1 }
 0x1bb   :  { %v1995_v8 = vmul.f32 0.5, %v1981_v38  ;;  %v1997_v46 = vmul.f32 0.5, %v1983_v39  ;;  %v1988_v47 = vadd.f32 %v1952_v29, %v1686_v44  ;;  %v1990_v15 = vadd.f32 %v1960_v31, %v1772_v45 }
 0x1bc   :  { %2678 = vtanh.f32 %v1994_v10  ;;  %v2001_v48 = vmul.f32 0.5, %v1987_v43  ;;  %v2003_v49 = vmul.f32 0.5, %v1989_v11  ;;  %v1972_v29 = vrot.slane %v2856_v24, %v85_v13 }
 0x1bd   :  { %2680 = vtanh.f32 %v1996_v42  ;;  %v2002_v50 = vmul.f32 0.5, %v1988_v47  ;;  %v2004_v51 = vmul.f32 0.5, %v1990_v15  ;;  %v1964_v11 = vrot.slane %v2856_v24, %v81_v12 }
 0x1be   :  { %2682 = vtanh.f32 %v1995_v8  ;;  %v1968_v44 = vrot.slane %v2856_v24, %v141_v9 }
 0x1bf   :  { %2684 = vtanh.f32 %v1997_v46 }
 0x1c0   :  { %2686 = vtanh.f32 %v2001_v48 }
 0x1c1   :  { %2688 = vtanh.f32 %v2003_v49 }
 0x1c2   :  { %2690 = vtanh.f32 %v2002_v50 }
 0x1c3   :  { %2692 = vtanh.f32 %v2004_v51 }
 0x1c6   :  { %v2679_v52 = vpop.eup %2678 }
 0x1c7   :  { %v2681_v53 = vpop.eup %2680  ;;  %v2022_v54 = vmul.f32 0.5, %v2679_v52 }
 0x1c8   :  { %v2683_v55 = vpop.eup %2682  ;;  %v2024_v56 = vmul.f32 0.5, %v2681_v53 }
 0x1c9   :  { %v2685_v27 = vpop.eup %2684  ;;  %v2036_v57 = vadd.f32 0.5, %v2022_v54  ;;  %v2023_v58 = vmul.f32 0.5, %v2683_v55 }
 0x1ca   :  { %v2687_v59 = vpop.eup %2686  ;;  %v2038_v28 = vadd.f32 0.5, %v2024_v56  ;;  %v2025_v60 = vmul.f32 0.5, %v2685_v27 }
 0x1cb   :  { %v2689_v61 = vpop.eup %2688  ;;  %2050 = vst [vmem:[%s2922_s5] sm:$0xff] %v2036_v57  ;;  %v2037_v34 = vadd.f32 0.5, %v2023_v58  ;;  %v2029_v62 = vmul.f32 0.5, %v2687_v59 }
 0x1cc   :  { %v2691_v63 = vpop.eup %2690  ;;  %2052 = vst [vmem:[%s2922_s5 + $0x10] sm:$0xff] %v2038_v28  ;;  %v2039_v0 = vadd.f32 0.5, %v2025_v60  ;;  %v2031_v1 = vmul.f32 0.5, %v2689_v61 }
 0x1cd   :  { %v2693_v2 = vpop.eup %2692  ;;  %2051 = vst [vmem:[%s2922_s5 + $0x8] sm:$0xff] %v2037_v34  ;;  %v2043_v3 = vadd.f32 0.5, %v2029_v62  ;;  %v2030_v4 = vmul.f32 0.5, %v2691_v63 }
 0x1ce   :  { %2053 = vst [vmem:[%s2922_s5 + $0x18] sm:$0xff] %v2039_v0  ;;  %v2045_v5 = vadd.f32 0.5, %v2031_v1  ;;  %v2032_v6 = vmul.f32 0.5, %v2693_v2 }
 0x1cf   :  { %2058 = vst [vmem:[%s2922_s5 + $0x38] sm:$0xff] %v2043_v3  ;;  %v2044_v14 = vadd.f32 0.5, %v2030_v4 }
 0x1d0   :  { %2060 = vst [vmem:[%s2922_s5 + $0x48] sm:$0xff] %v2045_v5  ;;  %v2046_v16 = vadd.f32 0.5, %v2032_v6 }
 0x1d1   :  { %2059 = vst [vmem:[%s2922_s5 + $0x40] sm:$0xff] %v2044_v14 }
 0x1d2   :  { %2061 = vst [vmem:[%s2922_s5 + $0x50] sm:$0xff] %v2046_v16 }
 0x1d8   :  { %v2310_v17 = vpop.f32.mrb[4].mxu1 }
 0x1d9   :  { %v2311_v18 = vpop.f32.mrb[5].mxu1 }
 0x1da   :  { %v2312_v19 = vadd.f32 %v2311_v18, %v2310_v17  ;;  %v2313_v20 = vpop.f32.mrb[6].mxu1 }
 0x1db   :  { %v2314_v21 = vpop.f32.mrb[7].mxu1 }
 0x1dc   :  { %v2315_v22 = vadd.f32 %v2314_v21, %v2313_v20 }
 0x1f8   :  { %v2332_v23 = vpop.f32.mrb[8].mxu1 }
 0x1f9   :  { %v2333_v25 = vpop.f32.mrb[9].mxu1 }
 0x1fa   :  { %v2334_v26 = vadd.f32 %v2333_v25, %v2332_v23  ;;  %v2335_v31 = vpop.f32.mrb[10].mxu1 }
 0x1fb   :  { %v2336_v32 = vpop.f32.mrb[11].mxu1 }
 0x1fc   :  { %v1937_v33 = vadd.f32 %v2334_v26, %v2312_v19  ;;  %v2337_v30 = vadd.f32 %v2336_v32, %v2335_v31 }
 0x1fe   :  { %v1986_v35 = vadd.f32 %v1972_v29, %v1937_v33  ;;  %v1940_v36 = vadd.f32 %v2337_v30, %v2315_v22 }
 0x200   :  { %v2000_v37 = vmul.f32 0.5, %v1986_v35  ;;  %v1993_v38 = vadd.f32 %v1972_v29, %v1940_v36 }
 0x202   :  { %2694 = vtanh.f32 %v2000_v37  ;;  %v2007_v39 = vmul.f32 0.5, %v1993_v38 }
 0x204   :  { %2696 = vtanh.f32 %v2007_v39 }
 0x20c   :  { %v2695_v40 = vpop.eup %2694 }
 0x20d   :  { %v2028_v41 = vmul.f32 0.5, %v2695_v40 }
 0x20e   :  { %v2697_v10 = vpop.eup %2696 }
 0x20f   :  { %v2042_v42 = vadd.f32 0.5, %v2028_v41  ;;  %v2035_v43 = vmul.f32 0.5, %v2697_v10 }
 0x211   :  { %2057 = vst.msk [vmem:[%s2922_s5 + $0x30] sm:$0xff] %vm2056_vm0, %v2042_v42  ;;  %v2049_v13 = vadd.f32 0.5, %v2035_v43 }
 0x213   :  { %2064 = vst.msk [vmem:[%s2922_s5 + $0x68] sm:$0xff] %vm2056_vm0, %v2049_v13 }
 0x237   :  { %v1852_v45 = vpop.f32.mrb[4].mxu0 }
 0x238   :  { %v1984_v8 = vadd.f32 %v1964_v11, %v1852_v45  ;;  %v1854_v46 = vpop.f32.mrb[5].mxu0 }
 0x239   :  { %v1985_v47 = vadd.f32 %v1968_v44, %v1854_v46  ;;  %v1856_v15 = vpop.f32.mrb[6].mxu0 }
 0x23a   :  { %v1998_v48 = vmul.f32 0.5, %v1984_v8  ;;  %v1991_v49 = vadd.f32 %v1964_v11, %v1856_v15  ;;  %v1858_v50 = vpop.f32.mrb[7].mxu0 }
 0x23b   :  { %v1999_v51 = vmul.f32 0.5, %v1985_v47  ;;  %v1992_v52 = vadd.f32 %v1968_v44, %v1858_v50 }
 0x23c   :  { %2698 = vtanh.f32 %v1998_v48  ;;  %v2005_v53 = vmul.f32 0.5, %v1991_v49 }
 0x23d   :  { %2700 = vtanh.f32 %v1999_v51  ;;  %v2006_v54 = vmul.f32 0.5, %v1992_v52 }
 0x23e   :  { %2702 = vtanh.f32 %v2005_v53 }
 0x23f   :  { %2704 = vtanh.f32 %v2006_v54 }
 0x246   :  { %v2699_v12 = vpop.eup %2698 }
 0x247   :  { %v2701_v7 = vpop.eup %2700  ;;  %v2026_v55 = vmul.f32 0.5, %v2699_v12 }
 0x248   :  { %v2703_v9 = vpop.eup %2702  ;;  %v2027_v24 = vmul.f32 0.5, %v2701_v7 }
 0x249   :  { %v2705_v56 = vpop.eup %2704  ;;  %v2040_v27 = vadd.f32 0.5, %v2026_v55  ;;  %v2033_v57 = vmul.f32 0.5, %v2703_v9 }
 0x24a   :  { %v2041_v58 = vadd.f32 0.5, %v2027_v24  ;;  %v2034_v59 = vmul.f32 0.5, %v2705_v56 }
 0x24b   :  { %2054 = vst [vmem:[%s2922_s5 + $0x20] sm:$0xff] %v2040_v27  ;;  %v2047_v28 = vadd.f32 0.5, %v2033_v57 }
 0x24c   :  { %2055 = vst [vmem:[%s2922_s5 + $0x28] sm:$0xff] %v2041_v58  ;;  %v2048_v60 = vadd.f32 0.5, %v2034_v59 }
 0x24d   :  { %2062 = vst [vmem:[%s2922_s5 + $0x58] sm:$0xff] %v2047_v28 }
 0x24e   :  { %2063 = vst [vmem:[%s2922_s5 + $0x60] sm:$0xff] %v2048_v60 }
 0x24f   :  { %2069 = vsyncpa [#allocation3], 1 }

</bundles_post_ra>
